<compile_context>
chip_gen: v7x
topology: tpu7x:2x2x1
jax: 0.10.0
libtpu: 0.0.40
codegen_flags: <defaults>
</compile_context>

<pallas_src>
import math

import jax
import jax.numpy as jnp
from jax.experimental import pallas as pl
from jax.experimental.pallas import tpu as pltpu


# Per-block byte budget.  Double-buffered input + output => worst case 4x this in VMEM
# (16 MiB), comfortably inside every generation's VMEM (v7x: 64 MiB physical).
_MAX_BLOCK_BYTES = 4 * 1024 * 1024


def _flatten_copy_kernel(x_ref, o_ref):
    # Identity copy of one lane-dense (tb, tn) tile of the flattened (B, N) view.
    o_ref[...] = x_ref[...]


def _pick_tile(dim, align, max_elems, prefer_split):
    """Largest `align`-multiple divisor of `dim` that is <= max_elems.

    If `prefer_split`, prefer the largest such tile that still leaves >= 2 grid blocks
    (so both v7x TensorCores get work).  Returns None if no aligned divisor fits, in
    which case the caller falls back to a full-extent block (no padding DMA).
    """
    best_any = None
    best_split = None
    t = align
    limit = min(dim, max_elems)
    while t <= limit:
        if dim % t == 0:
            best_any = t
            if dim // t >= 2:
                best_split = t
        t += align
    if prefer_split and best_split is not None:
        return best_split
    return best_any


def flatten(x):
    """torch.flatten(x, 1): (B, d1, ..., dk) -> (B, d1*...*dk) as a tiled Pallas copy."""
    assert x.ndim >= 2, "torch.flatten(x, 1) needs a batch dim plus at least one more dim"
    B = int(x.shape[0])
    N = int(math.prod(x.shape[1:]))
    itemsize = jnp.dtype(x.dtype).itemsize

    # Layout-preserving (metadata-only) reshape of the row-major input.
    xf = x.reshape(B, N)

    # ---- row (sublane) tile: multiple of 8 if B allows, else full extent -------------
    max_rows = max(_MAX_BLOCK_BYTES // max(N * itemsize, 1), 8)
    tb = _pick_tile(B, 8, max_rows, prefer_split=False)
    if tb is None:
        tb = B                              # small / odd batch: full-extent rows
    grid_b = B // tb

    # ---- column (lane) tile: lane-dense multiple of 128 if N allows ------------------
    max_cols = max(_MAX_BLOCK_BYTES // max(tb * itemsize, 1), 128)
    tn = _pick_tile(N, 128, max_cols, prefer_split=(grid_b < 2))
    padded = False
    if tn is None:
        if tb * N * itemsize <= 4 * _MAX_BLOCK_BYTES:
            tn = N                          # small non-128-divisible N: one full-extent block
        else:
            # TODO(synk): rare path (huge N with no 128-aligned divisor) pays one pad copy.
            Np = ((N + 127) // 128) * 128
            xf = jnp.pad(xf, ((0, 0), (0, Np - N)))
            padded = True
            tn = _pick_tile(Np, 128, max_cols, prefer_split=(grid_b < 2))
    Nrun = int(xf.shape[1])
    grid_n = Nrun // tn

    out = pl.pallas_call(
        _flatten_copy_kernel,
        out_shape=jax.ShapeDtypeStruct((B, Nrun), x.dtype),
        grid=(grid_b, grid_n),
        in_specs=[pl.BlockSpec((tb, tn), lambda i, j: (i, j))],
        out_specs=pl.BlockSpec((tb, tn), lambda i, j: (i, j)),
        compiler_params=pltpu.CompilerParams(
            dimension_semantics=("parallel", "parallel")),
    )(xf)
    return out[:, :N] if padded else out


if __name__ == "__main__":
    key = jax.random.PRNGKey(0)
    k1, k2, k3 = jax.random.split(key, 3)

    flatten_jit = jax.jit(flatten)

    # Primary case: NCHW activation as fed to Flatten inside DSN.
    x = jax.random.normal(k1, (2, 4, 16, 16), jnp.float32)
    y = jax.block_until_ready(flatten_jit(x))
    assert y.shape == (2, 4 * 16 * 16)
    assert y.dtype == x.dtype
    assert jnp.array_equal(y, x.reshape(2, -1))

    # bf16 input: dtype is preserved end-to-end (no f32 round trip through HBM).
    x_bf16 = jax.random.normal(k2, (8, 4, 8, 32), jnp.float32).astype(jnp.bfloat16)
    y_bf16 = jax.block_until_ready(flatten_jit(x_bf16))
    assert y_bf16.shape == (8, 4 * 8 * 32)
    assert y_bf16.dtype == jnp.bfloat16
    assert jnp.array_equal(y_bf16, x_bf16.reshape(8, -1))

    # Non-128-divisible flattened width: falls back to a full-extent block (no padding DMA).
    x_odd = jax.random.normal(k3, (2, 3, 5, 7), jnp.float32)
    y_odd = jax.block_until_ready(flatten_jit(x_odd))
    assert y_odd.shape == (2, 3 * 5 * 7)
    assert jnp.array_equal(y_odd, x_odd.reshape(2, -1))

    print("KERNEL_OK")
</pallas_src>

<mosaic_0001>
module attributes {stable_mosaic.version = 11 : i64} {
  func.func @_flatten_copy_kernel(%arg0: i32, %arg1: i32, %arg2: memref<2x512xf32, #tpu.memory_space<vmem>>, %arg3: memref<2x512xf32, #tpu.memory_space<vmem>>) attributes {dimension_semantics = [#tpu.dimension_semantics<parallel>, #tpu.dimension_semantics<parallel>], iteration_bounds = array<i64: 1, 2>, scalar_prefetch = 0 : i64, scratch_operands = 0 : i64, tpu.core_type = #tpu.core_type<tc>, window_params = [{transform_indices = @transform_0, window_bounds = array<i64: 2, 512>}, {transform_indices = @transform_1, window_bounds = array<i64: 2, 512>}]} {
    %c0 = arith.constant 0 : index
    %c0_0 = arith.constant 0 : index
    %0 = vector.load %arg2[%c0, %c0_0] : memref<2x512xf32, #tpu.memory_space<vmem>>, vector<2x512xf32>
    %c0_1 = arith.constant 0 : index
    %c0_2 = arith.constant 0 : index
    %1 = vector.load %arg3[%c0_1, %c0_2] : memref<2x512xf32, #tpu.memory_space<vmem>>, vector<2x512xf32>
    tpu.vector_store %arg3[%c0_1, %c0_2], %0 {strides = array<i32>} : memref<2x512xf32, #tpu.memory_space<vmem>>, vector<2x512xf32>,
    return
  }
  func.func @transform_0(%arg0: i32, %arg1: i32) -> (i32, i32) {
    %c0_i32 = arith.constant 0 : i32
    return %arg0, %arg1 : i32, i32
  }
  func.func @transform_1(%arg0: i32, %arg1: i32) -> (i32, i32) {
    %c0_i32 = arith.constant 0 : i32
    return %arg0, %arg1 : i32, i32
  }
}

</mosaic_0001>

<bundles_post_ra>
// kernel: flatten.1
= control target key start
LH: loop header
LB: loop body
LE: loop exit
PB: predicated region body
PF: predicated region fallthrough
CT: control target
= control target key end

     0   :  { %6 = vsyncpa [#allocation3], 0  ;;  %s512_s0 = inlined_call_operand.vmem [shape: f32[2,1024], index: 0, kind: input, shape index: {}]   ;;  %s513_s1 = inlined_call_operand.hbm [shape: f32[2,1024], index: 1, kind: output, shape index: {}]  }
   0x1   :  { %8 = vsyncpa [#allocation3 + $0x1], 0  ;;  %s401_s6 = smov 0   ;;  %s403_s7 = smov 0  }
   0x2   :  { %s405_s8 = smov 0   ;;  %s407_s9 = smov 0  }
   0x3   :  { %s409_s10 = smov 0   ;;  %s411_s11 = smov 0  }
   0x4 LB: > { %s241_s12 = sadd.s32 4294967295, %s388_s11   ;;  %s242_s13 = sadd.s32 4294967294, %s388_s11   ;;  %s388_s11 = sphi %s411_s11, %s14_s11   ;;  %s384_s10 = sphi %s409_s10, %s520_s10   ;;  %s380_s9 = sphi %s407_s9, %s519_s9   ;;  %s376_s8 = sphi %s405_s8, %s518_s8   ;;  %s372_s7 = sphi %s403_s7, %s517_s7   ;;  %s368_s6 = sphi %s401_s6, %s516_s6  }
   0x5   : > { %s23_s14 = sadd.s32 1, %s384_s10  ;;  %s63_s15 = sadd.s32 1, %s376_s8 }
   0x6   : > { %p24_p0 = scmp.ge.s32.totalorder %s23_s14, 2  ;;  %p73_p1 = scmp.ne.s32.totalorder %s376_s8, %s372_s7 }
   0x7   : > { %p74_p2 = scmp.eq.s32.totalorder %s241_s12, 1  ;;  %p79_p3 = scmp.ne.s32.totalorder %s372_s7, %s368_s6 }
   0x8   : > { %s522_s14 = smov (%p24_p0, %s23_s14), 0  ;;  %p80_p5 = scmp.eq.s32.totalorder %s242_s13, 1 }
   0x9   : > { %p441_p4 = por %p74_p2, %p73_p1  ;;  %s59_s17 = ssub.s32 %s384_s10, %s522_s14 }
   0xa   : > { %p245_p6 = scmp.ge.s32.totalorder %s388_s11, 1  ;;  %p61_p7 = scmp.eq.s32.totalorder %s59_s17, 0 }
   0xb   : > { %p448_p8 = por %p80_p5, %p79_p3  ;;  %p111_p9 = scmp.lt.s32.totalorder %s388_s11, 3 }
   0xc   : > { %s454_s19 = scalar_select %p61_p7, %s376_s8, %s63_s15  }
   0xd   : > { %p112_p10 = pnand %p245_p6, %p111_p9 }
   0xe   : > { %s132_s20 = sand.u32 (!%p112_p10), 1, %s372_s7   ;;  %s247_s21 = sshll.u32 (!%p112_p10), %s380_s9, 2 }
   0xf   : > { %115 = sbr.rel (%p112_p10) target bundleno = 42 (0x2a), region = 24  ;;  %s246_s22 = sshll.u32 (!%p112_p10), %s132_s20, 3 }
  0x10   : > { %p138_p11 = scmp.lt.s32.totalorder (!%p112_p10), %s247_s21, 7  ;;  %s134_s23 = scalar_lea.vmem (!%p112_p10), [#allocation2], %s246_s22 }
  0x11   : > { %s165_s24 = sshll.u32 (!%p112_p10), %s134_s23, 4  ;;  %s254_s25 = sshll.u32 (!%p112_p10), %s380_s9, 7  ;;  %s459_s24 = int_to_ptr.vmem [resolvable:$true] %s165_s24 }
  0x12   : > { %s467_s3 = scalar_lea.hbm (!%p112_p10), %s513_s1, %s254_s25  ;;  %s149_s4 = scalar_lea.sflag (!%p112_p10), [#allocation3], %s132_s20 }
  0x13   : > { %s310_s5 = scalar_lea.vmem (!%p112_p10), %s459_s24, 128  ;;  %s390_s9 = smov (!%p112_p10), [#allocation2]  }
  0x14   : > { %p311_p12 = scmp.ne.s32.totalorder (!%p112_p10), %s459_s24, %s310_s5  ;;  %s314_s12 = sshll.u32 (!%p112_p10), %s390_s9, 4  ;;  %s315_s12 = int_to_ptr.vmem [resolvable:$false] %s314_s12 }
  0x15   : > { %s316_s13 = scalar_lea.vmem (!%p112_p10), %s315_s12, 256  ;;  %p317_p1 = scmp.lt.s32.totalorder (!%p112_p10), %s459_s24, %s315_s12 }
  0x16   : > { %s524_s21 = smov (!%p138_p11, %s247_s21), 7  ;;  %p312_p13 = pnand %p311_p12, %p441_p4 }
  0x17   : > { %s248_s26 = sshll.u32 %s524_s21, 1  ;;  %p318_p2 = scmp.lt.s32.totalorder %s316_s13, %s310_s5 }
  0x18   : > { %s143_s29 = scalar_lea.vmem %s512_s0, %s248_s26  ;;  %p313_p0 = pneg %p312_p13 }
  0x19   : > { %v146_v0 = vld [vmem:[%s143_s29] sm:$0xff]  ;;  %p319_p3 = por %p318_p2, %p317_p1 }
  0x1a   : > { %147 = vst [vmem:[%s134_s23] sm:$0xff] %v146_v0 }
  0x1b   : > { %p320_p5 = pnand %p319_p3, %p313_p0 }
  0x1d   : > { %323 = shalt.err (!%p320_p5)
}
  0x1e   : > { %s324_s15 = scalar_lea.hbm %s467_s3, 128  ;;  %s328_s21 = scalar_lea.hbm %s513_s1, 256 }
  0x1f   : > { %p325_p6 = scmp.ne.s32.totalorder %s467_s3, %s324_s15  ;;  %p329_p10 = scmp.lt.u32.totalorder %s467_s3, %s513_s1 }
  0x20   : > { %p330_p11 = scmp.lt.u32.totalorder %s328_s21, %s324_s15  ;;  %p332_p13 = scmp.lt.u32.totalorder %s324_s15, %s467_s3 }
  0x21   : > { %p326_p7 = pnand %p325_p6, %p441_p4 }
  0x22   : > { %p331_p12 = por %p330_p11, %p329_p10 }
  0x23   : > { %p327_p9 = pneg %p326_p7 }
  0x24   : > { %p333_p0 = por %p332_p13, %p331_p12 }
  0x26   : > { %p334_p1 = pnand %p333_p0, %p327_p9 }
  0x28   : > { %337 = shalt.err (!%p334_p1)
}
  0x29   : > { %255 = dma.vmem_to_hbm [thread:$0]  (%p441_p4), %s459_s24, 128, %s467_s3, %s149_s4  }
  0x2a PF: > { %p261_p2 = scmp.ge.s32.totalorder %s388_s11, 2  ;;  %s177_s25 = sand.u32 1, %s368_s6  }
  0x2b   : > { %s178_s26 = scalar_lea.sflag [#allocation3], %s177_s25 }
  0x2c   : > { %p258_p3 = pnand %p261_p2, %p448_p8 }
  0x2e   : > { %363 = dma.done.wait (!%p258_p3), %s178_s26, 128  }
  0x2f   : > { %365 = vsyncadd (!%p258_p3), %s178_s26, 4294967168  ;;  %s14_s11 = sadd.s32 1, %s388_s11   ;;  %s516_s6 = smov %s372_s7 }
  0x30   : > { %p11_p5 = scmp.ge.s32.totalorder %s14_s11, 4   ;;  %s517_s7 = smov %s376_s8 }
  0x31   : > { %s518_s8 = smov %s454_s19  ;;  %s519_s9 = smov %s384_s10 }
  0x32   : > { %s520_s10 = smov %s522_s14  ;;  %13 = sbr.rel (!%p11_p5) target bundleno = 4 (0x4), region = 59 }
  0x39   :  { %183 = vsyncpa [#allocation3], 1 }
  0x3a   :  { %185 = vsyncpa [#allocation3 + $0x1], 1 }

</bundles_post_ra>
